<compile_context>
chip_gen: v6e
topology: v6e:2x2x1
jax: 0.10.0
libtpu: 0.0.40
codegen_flags: <defaults>
</compile_context>

<pallas_src>
import functools

import jax
import jax.numpy as jnp
import numpy as np
from jax import lax
from jax.experimental import pallas as pl
from jax.experimental.pallas import tpu as pltpu

TEMPERATURE = 0.07
WEIGHT_CE = 2.0
EPS = 1e-8            # SupConLoss eps
NORM_EPS = 1e-12      # F.normalize eps


def _round_up(x, m):
    return (x + m - 1) // m * m


def _choose_tiles(batch):
    """Returns (tq, tk, b_pad) with tq | b_pad, tk | b_pad and >= 2 anchor blocks."""
    b8 = _round_up(batch, 8)
    if b8 <= 512:
        # Two anchor blocks (keeps both v7x TensorCores busy), single key block.
        tq = _round_up((b8 + 1) // 2, 8)
        return tq, 2 * tq, 2 * tq
    # Large batches: 256-row anchor blocks, 512-col key blocks when divisible.
    b_pad = _round_up(b8, 256)
    tk = 512 if b_pad % 512 == 0 else 256
    return 256, tk, b_pad


def _fold_lanes(x, width):
    """Sum (R, C) -> (R, width) by adding lane-aligned column chunks (VPU adds only)."""
    acc = x[:, 0:width]
    for c in range(width, x.shape[1], width):
        acc = acc + x[:, c:c + width]
    return acc


def _supcon_kernel(feat_q_ref, featT_k_ref, lab_q_ref, lab_k_ref, out_ref,
                   denom_acc, possim_acc, poscnt_acc,
                   *, b_actual, b_pad, tq, tk, lane_w, eps):
    qi = pl.program_id(0)
    ki = pl.program_id(1)

    # First key block for this anchor block: zero the online accumulators.
    @pl.when(ki == 0)
    def _():
        denom_acc[...] = jnp.zeros_like(denom_acc)
        possim_acc[...] = jnp.zeros_like(possim_acc)
        poscnt_acc[...] = jnp.zeros_like(poscnt_acc)

    # Similarity tile on the MXU.  Anchors arrive L2-normalized [TQ, D]; keys arrive
    # pre-transposed [D, TK] with 1/temperature already folded in, so this is a plain
    # (1, 0) contraction with no per-step transpose / normalization / scaling.
    sim = jnp.dot(feat_q_ref[...], featT_k_ref[...],
                  preferred_element_type=jnp.float32)            # [TQ, TK]
    exp_sim = jnp.exp(sim)

    lab_q = lab_q_ref[...]                                        # [TQ, 1] int32
    lab_k = lab_k_ref[...]                                        # [1, TK] int32
    # Positive-pair mask (diagonal included, label == -1 excluded), as in the reference.
    pos = (lab_q == lab_k) & (lab_q != -1) & (lab_k != -1)        # [TQ, TK] bool

    # Lane-blocked partial accumulation (pure VPU adds); the cross-lane reduce
    # happens only once per anchor block, in the finalize below.
    possim_acc[...] += _fold_lanes(jnp.where(pos, sim, 0.0), lane_w)
    poscnt_acc[...] += _fold_lanes(jnp.where(pos, 1.0, 0.0), lane_w)

    # Denominator: exclude the diagonal and (if present) zero-padded key columns.
    # Only tiles that can actually contain such entries pay for the iota/select.
    row0 = qi * tq
    col0 = ki * tk
    needs_mask = (row0 < col0 + tk) & (col0 < row0 + tq)          # tile touches diagonal
    if b_actual < b_pad:
        needs_mask = needs_mask | (col0 + tk > b_actual)          # tile has padded cols

    @pl.when(needs_mask)
    def _():
        grow = row0 + lax.broadcasted_iota(jnp.int32, (tq, tk), 0)
        gcol = col0 + lax.broadcasted_iota(jnp.int32, (tq, tk), 1)
        excl = grow == gcol
        if b_actual < b_pad:
            excl = excl | (gcol >= b_actual)
        denom_acc[...] += _fold_lanes(jnp.where(excl, 0.0, exp_sim), lane_w)

    @pl.when(jnp.logical_not(needs_mask))
    def _():
        denom_acc[...] += _fold_lanes(exp_sim, lane_w)

    # Last key block: finalize the per-anchor-row SupCon contribution using
    #   sum(mask * log_prob) = sum(mask * sim) - sum(mask) * log(denom + eps)
    @pl.when(ki == pl.num_programs(1) - 1)
    def _():
        denom = jnp.sum(denom_acc[...], axis=1, keepdims=True)     # [TQ, 1]
        cnt = jnp.sum(poscnt_acc[...], axis=1, keepdims=True)
        psim = jnp.sum(possim_acc[...], axis=1, keepdims=True)
        mean_log_prob_pos = (psim - cnt * jnp.log(denom + eps)) / (cnt + eps)
        out_ref[...] = -mean_log_prob_pos


def _ce_kernel(logits_ref, lab_ref, out_ref):
    lg = logits_ref[...].astype(jnp.float32)                      # [TQ, C]
    lab = lab_ref[...]                                            # [TQ, 1] int32
    m = jnp.max(lg, axis=1, keepdims=True)
    sh = lg - m
    logz = jnp.log(jnp.sum(jnp.exp(sh), axis=1, keepdims=True))
    cls = lax.broadcasted_iota(jnp.int32, lg.shape, 1)
    onehot = (cls == lab).astype(jnp.float32)
    # TODO(synk): rows with label == -1 contribute CE = 0 here; torch CrossEntropyLoss
    # has no ignore_index=-1 in this module, so such labels are assumed absent from CE.
    out_ref[...] = -jnp.sum(onehot * (sh - logz), axis=1, keepdims=True)


def contrastive_loss_with_ce(features, labels, logits=None,
                             *, temperature=TEMPERATURE, weight_ce=WEIGHT_CE):
    """features: [B, D] float, labels: [B] int, logits: [B, C] float -> scalar loss."""
    B, D = features.shape
    labels = labels.astype(jnp.int32)
    tq, tk, b_pad = _choose_tiles(B)
    lane_w = 128 if tk % 128 == 0 else tk

    # Hoisted preprocessing (one fused XLA pass over B x D):
    #   * f32 L2 normalization (matches F.normalize, eps = 1e-12)
    #   * transposed key copy with 1/temperature folded in.
    f = features.astype(jnp.float32)
    fn = f * lax.rsqrt(jnp.maximum(jnp.sum(f * f, axis=1, keepdims=True),
                                   NORM_EPS * NORM_EPS))
    if b_pad != B:
        fn = jnp.pad(fn, ((0, b_pad - B), (0, 0)))
        labels = jnp.pad(labels, (0, b_pad - B), constant_values=-1)
    fnt = (fn * (1.0 / temperature)).T                            # [D, b_pad]
    lab_col = labels.reshape(b_pad, 1)
    lab_row = labels.reshape(1, b_pad)

    num_q = b_pad // tq
    num_k = b_pad // tk

    sup_kernel = functools.partial(
        _supcon_kernel, b_actual=B, b_pad=b_pad, tq=tq, tk=tk,
        lane_w=lane_w, eps=EPS)

    sup_rows = pl.pallas_call(
        sup_kernel,
        out_shape=jax.ShapeDtypeStruct((b_pad, 1), jnp.float32),
        grid_spec=pltpu.PrefetchScalarGridSpec(
            num_scalar_prefetch=0,
            grid=(num_q, num_k),
            in_specs=[
                pl.BlockSpec((tq, D), lambda qi, ki: (qi, 0)),    # anchors   [B, D]
                pl.BlockSpec((D, tk), lambda qi, ki: (0, ki)),    # keys^T/T  [D, B]
                pl.BlockSpec((tq, 1), lambda qi, ki: (qi, 0)),    # labels col
                pl.BlockSpec((1, tk), lambda qi, ki: (0, ki)),    # labels row
            ],
            out_specs=pl.BlockSpec((tq, 1), lambda qi, ki: (qi, 0)),
            scratch_shapes=[
                pltpu.VMEM((tq, lane_w), jnp.float32),   # denom partials
                pltpu.VMEM((tq, lane_w), jnp.float32),   # sum(mask * sim) partials
                pltpu.VMEM((tq, lane_w), jnp.float32),   # sum(mask) partials
            ]),
        compiler_params=pltpu.CompilerParams(
            dimension_semantics=("parallel", "arbitrary"),
            vmem_limit_bytes=48 * 1024 * 1024),
    )(fn, fnt, lab_col, lab_row)

    loss = jnp.mean(sup_rows[:B, 0])

    if logits is not None:
        C = logits.shape[1]
        logits_p = logits if b_pad == B else jnp.pad(logits, ((0, b_pad - B), (0, 0)))
        ce_rows = pl.pallas_call(
            _ce_kernel,
            out_shape=jax.ShapeDtypeStruct((b_pad, 1), jnp.float32),
            grid_spec=pltpu.PrefetchScalarGridSpec(
                num_scalar_prefetch=0,
                grid=(num_q,),
                in_specs=[
                    pl.BlockSpec((tq, C), lambda i: (i, 0)),
                    pl.BlockSpec((tq, 1), lambda i: (i, 0)),
                ],
                out_specs=pl.BlockSpec((tq, 1), lambda i: (i, 0))),
            compiler_params=pltpu.CompilerParams(
                dimension_semantics=("parallel",)),
        )(logits_p, lab_col)
        loss = loss + weight_ce * jnp.mean(ce_rows[:B, 0])

    return loss


def _reference(features, labels, logits,
               temperature=TEMPERATURE, weight_ce=WEIGHT_CE):
    """Pure-JAX replica of the PyTorch forward for validation."""
    f = features.astype(jnp.float32)
    fn = f / jnp.maximum(jnp.sqrt(jnp.sum(f * f, axis=1, keepdims=True)), NORM_EPS)
    sim = jnp.matmul(fn, fn.T, precision=lax.Precision.HIGHEST) / temperature
    lab = labels.reshape(-1, 1)
    valid = (lab != -1).astype(jnp.float32)
    mask = (lab == lab.T).astype(jnp.float32) * (valid @ valid.T)
    logits_mask = 1.0 - jnp.eye(f.shape[0], dtype=jnp.float32)
    exp_sim = jnp.exp(sim) * logits_mask
    log_prob = sim - jnp.log(jnp.sum(exp_sim, axis=1, keepdims=True) + EPS)
    mlp = jnp.sum(mask * log_prob, axis=1) / (jnp.sum(mask, axis=1) + EPS)
    supcon = -jnp.mean(mlp)
    ls = jax.nn.log_softmax(logits.astype(jnp.float32), axis=1)
    ce = -jnp.mean(jnp.take_along_axis(ls, labels.reshape(-1, 1).astype(jnp.int32), axis=1))
    return supcon + weight_ce * ce


if __name__ == "__main__":
    key = jax.random.PRNGKey(0)
    k1, k2, k3, k4, k5, k6 = jax.random.split(key, 6)

    # --- small case: grid (2, 1) with padded rows ---
    B, D, C = 8, 32, 8
    features = jax.random.normal(k1, (B, D), dtype=jnp.float32)
    labels = jax.random.randint(k2, (B,), 0, C, dtype=jnp.int32)
    logits = jax.random.normal(k3, (B, C), dtype=jnp.float32)

    loss = jax.block_until_ready(contrastive_loss_with_ce(features, labels, logits))
    ref = jax.block_until_ready(_reference(features, labels, logits))
    np.testing.assert_allclose(np.asarray(loss), np.asarray(ref), rtol=1e-5, atol=5e-5)

    # --- larger case exercising multi-anchor-block accumulation (no padding) ---
    B2, D2, C2 = 272, 64, 16
    features2 = jax.random.normal(k4, (B2, D2), dtype=jnp.float32)
    labels2 = jax.random.randint(k5, (B2,), 0, C2, dtype=jnp.int32)
    logits2 = jax.random.normal(k6, (B2, C2), dtype=jnp.float32)

    loss2 = jax.block_until_ready(contrastive_loss_with_ce(features2, labels2, logits2))
    ref2 = jax.block_until_ready(_reference(features2, labels2, logits2))
    np.testing.assert_allclose(np.asarray(loss2), np.asarray(ref2), rtol=1e-4, atol=2e-4)

    print("KERNEL_OK")
</pallas_src>

<mosaic_0001>
module attributes {stable_mosaic.version = 11 : i64} {
  func.func @_supcon_kernel(%arg0: i32, %arg1: i32, %arg2: memref<8x32xf32, #tpu.memory_space<vmem>>, %arg3: memref<32x16xf32, #tpu.memory_space<vmem>>, %arg4: memref<8x1xi32, #tpu.memory_space<vmem>>, %arg5: memref<1x16xi32, #tpu.memory_space<vmem>>, %arg6: memref<8x1xf32, #tpu.memory_space<vmem>>, %arg7: memref<8x16xf32, #tpu.memory_space<vmem>>, %arg8: memref<8x16xf32, #tpu.memory_space<vmem>>, %arg9: memref<8x16xf32, #tpu.memory_space<vmem>>) attributes {dimension_semantics = [#tpu.dimension_semantics<parallel>, #tpu.dimension_semantics<arbitrary>], iteration_bounds = array<i64: 2, 1>, scalar_prefetch = 0 : i64, scratch_operands = 3 : i64, tpu.core_type = #tpu.core_type<tc>, window_params = [{transform_indices = @transform_0, window_bounds = array<i64: 8, 32>}, {transform_indices = @transform_1, window_bounds = array<i64: 32, 16>}, {transform_indices = @transform_2, window_bounds = array<i64: 8, 1>}, {transform_indices = @transform_3, window_bounds = array<i64: 1, 16>}, {transform_indices = @transform_4, window_bounds = array<i64: 8, 1>}]} {
    %c0_i32 = arith.constant 0 : i32
    %0 = arith.cmpi eq, %arg1, %c0_i32 : i32
    %1 = arith.extui %0 : i1 to i32
    %c0_i32_0 = arith.constant 0 : i32
    %2 = arith.cmpi ne, %1, %c0_i32_0 : i32
    scf.if %2 {
      %cst_28 = arith.constant 0.000000e+00 : f32
      %49 = vector.broadcast %cst_28 : f32 to vector<8x16xf32>
      %c0_29 = arith.constant 0 : index
      %c0_30 = arith.constant 0 : index
      %50 = vector.load %arg7[%c0_29, %c0_30] : memref<8x16xf32, #tpu.memory_space<vmem>>, vector<8x16xf32>
      tpu.vector_store %arg7[%c0_29, %c0_30], %49 {strides = array<i32>} : memref<8x16xf32, #tpu.memory_space<vmem>>, vector<8x16xf32>,
      %cst_31 = arith.constant 0.000000e+00 : f32
      %51 = vector.broadcast %cst_31 : f32 to vector<8x16xf32>
      %c0_32 = arith.constant 0 : index
      %c0_33 = arith.constant 0 : index
      %52 = vector.load %arg8[%c0_32, %c0_33] : memref<8x16xf32, #tpu.memory_space<vmem>>, vector<8x16xf32>
      tpu.vector_store %arg8[%c0_32, %c0_33], %51 {strides = array<i32>} : memref<8x16xf32, #tpu.memory_space<vmem>>, vector<8x16xf32>,
      %cst_34 = arith.constant 0.000000e+00 : f32
      %53 = vector.broadcast %cst_34 : f32 to vector<8x16xf32>
      %c0_35 = arith.constant 0 : index
      %c0_36 = arith.constant 0 : index
      %54 = vector.load %arg9[%c0_35, %c0_36] : memref<8x16xf32, #tpu.memory_space<vmem>>, vector<8x16xf32>
      tpu.vector_store %arg9[%c0_35, %c0_36], %53 {strides = array<i32>} : memref<8x16xf32, #tpu.memory_space<vmem>>, vector<8x16xf32>,
    } else {
    }
    %c0 = arith.constant 0 : index
    %c0_1 = arith.constant 0 : index
    %3 = vector.load %arg2[%c0, %c0_1] : memref<8x32xf32, #tpu.memory_space<vmem>>, vector<8x32xf32>
    %c0_2 = arith.constant 0 : index
    %c0_3 = arith.constant 0 : index
    %4 = vector.load %arg3[%c0_2, %c0_3] : memref<32x16xf32, #tpu.memory_space<vmem>>, vector<32x16xf32>
    %cst = arith.constant dense<0.000000e+00> : vector<8x16xf32>
    %5 = tpu.matmul %3, %4, %cst {dimension_numbers = #tpu.dot_dimension_numbers<[1], [0], [0], [1], [0, 0, 1, 1], [], []>} : vector<8x32xf32>, vector<32x16xf32>, vector<8x16xf32> -> vector<8x16xf32>
    %6 = math.exp %5 : vector<8x16xf32>
    %c0_4 = arith.constant 0 : index
    %c0_5 = arith.constant 0 : index
    %7 = vector.load %arg4[%c0_4, %c0_5] : memref<8x1xi32, #tpu.memory_space<vmem>>, vector<8x1xi32>
    %c0_6 = arith.constant 0 : index
    %c0_7 = arith.constant 0 : index
    %8 = vector.load %arg5[%c0_6, %c0_7] : memref<1x16xi32, #tpu.memory_space<vmem>>, vector<1x16xi32>
    %9 = vector.broadcast %7 : vector<8x1xi32> to vector<8x16xi32>
    %10 = vector.broadcast %8 : vector<1x16xi32> to vector<8x16xi32>
    %11 = arith.cmpi eq, %9, %10 : vector<8x16xi32>
    %c-1_i32 = arith.constant -1 : i32
    %12 = vector.broadcast %c-1_i32 : i32 to vector<8x1xi32>
    %13 = arith.cmpi ne, %7, %12 : vector<8x1xi32>
    %14 = vector.broadcast %13 : vector<8x1xi1> to vector<8x16xi1>
    %15 = arith.andi %11, %14 : vector<8x16xi1>
    %c-1_i32_8 = arith.constant -1 : i32
    %16 = vector.broadcast %c-1_i32_8 : i32 to vector<1x16xi32>
    %17 = arith.cmpi ne, %8, %16 : vector<1x16xi32>
    %18 = vector.broadcast %17 : vector<1x16xi1> to vector<8x16xi1>
    %19 = arith.andi %15, %18 : vector<8x16xi1>
    %c0_9 = arith.constant 0 : index
    %c0_10 = arith.constant 0 : index
    %20 = vector.load %arg8[%c0_9, %c0_10] : memref<8x16xf32, #tpu.memory_space<vmem>>, vector<8x16xf32>
    %cst_11 = arith.constant 0.000000e+00 : f32
    %21 = vector.broadcast %cst_11 : f32 to vector<8x16xf32>
    %22 = arith.select %19, %5, %21 : vector<8x16xi1>, vector<8x16xf32>
    %23 = arith.addf %20, %22 : vector<8x16xf32>
    %c0_12 = arith.constant 0 : index
    %c0_13 = arith.constant 0 : index
    %24 = vector.load %arg8[%c0_12, %c0_13] : memref<8x16xf32, #tpu.memory_space<vmem>>, vector<8x16xf32>
    tpu.vector_store %arg8[%c0_12, %c0_13], %23 {strides = array<i32>} : memref<8x16xf32, #tpu.memory_space<vmem>>, vector<8x16xf32>,
    %c0_14 = arith.constant 0 : index
    %c0_15 = arith.constant 0 : index
    %25 = vector.load %arg9[%c0_14, %c0_15] : memref<8x16xf32, #tpu.memory_space<vmem>>, vector<8x16xf32>
    %cst_16 = arith.constant 1.000000e+00 : f32
    %cst_17 = arith.constant 0.000000e+00 : f32
    %26 = vector.broadcast %cst_16 : f32 to vector<8x16xf32>
    %27 = vector.broadcast %cst_17 : f32 to vector<8x16xf32>
    %28 = arith.select %19, %26, %27 : vector<8x16xi1>, vector<8x16xf32>
    %29 = arith.addf %25, %28 : vector<8x16xf32>
    %c0_18 = arith.constant 0 : index
    %c0_19 = arith.constant 0 : index
    %30 = vector.load %arg9[%c0_18, %c0_19] : memref<8x16xf32, #tpu.memory_space<vmem>>, vector<8x16xf32>
    tpu.vector_store %arg9[%c0_18, %c0_19], %29 {strides = array<i32>} : memref<8x16xf32, #tpu.memory_space<vmem>>, vector<8x16xf32>,
    %c8_i32 = arith.constant 8 : i32
    %31 = arith.muli %arg0, %c8_i32 : i32
    %c16_i32 = arith.constant 16 : i32
    %32 = arith.muli %arg1, %c16_i32 : i32
    %c16_i32_20 = arith.constant 16 : i32
    %33 = arith.addi %32, %c16_i32_20 : i32
    %34 = arith.cmpi slt, %31, %33 : i32
    %c8_i32_21 = arith.constant 8 : i32
    %35 = arith.addi %31, %c8_i32_21 : i32
    %36 = arith.cmpi slt, %32, %35 : i32
    %37 = arith.andi %34, %36 : i1
    %c16_i32_22 = arith.constant 16 : i32
    %38 = arith.addi %32, %c16_i32_22 : i32
    %c8_i32_23 = arith.constant 8 : i32
    %39 = arith.cmpi sgt, %38, %c8_i32_23 : i32
    %40 = arith.ori %37, %39 : i1
    %41 = arith.extui %40 : i1 to i32
    %c0_i32_24 = arith.constant 0 : i32
    %42 = arith.cmpi ne, %41, %c0_i32_24 : i32
    scf.if %42 {
      %49 = tpu.iota {dimensions = array<i32: 0>} : vector<8x16xi32>
      %50 = vector.broadcast %31 : i32 to vector<8x16xi32>
      %51 = arith.addi %50, %49 : vector<8x16xi32>
      %52 = tpu.iota {dimensions = array<i32: 1>} : vector<8x16xi32>
      %53 = vector.broadcast %32 : i32 to vector<8x16xi32>
      %54 = arith.addi %53, %52 : vector<8x16xi32>
      %55 = arith.cmpi eq, %51, %54 : vector<8x16xi32>
      %c8_i32_28 = arith.constant 8 : i32
      %56 = vector.broadcast %c8_i32_28 : i32 to vector<8x16xi32>
      %57 = arith.cmpi sge, %54, %56 : vector<8x16xi32>
      %58 = arith.ori %55, %57 : vector<8x16xi1>
      %c0_29 = arith.constant 0 : index
      %c0_30 = arith.constant 0 : index
      %59 = vector.load %arg7[%c0_29, %c0_30] : memref<8x16xf32, #tpu.memory_space<vmem>>, vector<8x16xf32>
      %cst_31 = arith.constant 0.000000e+00 : f32
      %60 = vector.broadcast %cst_31 : f32 to vector<8x16xf32>
      %61 = arith.select %58, %60, %6 : vector<8x16xi1>, vector<8x16xf32>
      %62 = arith.addf %59, %61 : vector<8x16xf32>
      %c0_32 = arith.constant 0 : index
      %c0_33 = arith.constant 0 : index
      %63 = vector.load %arg7[%c0_32, %c0_33] : memref<8x16xf32, #tpu.memory_space<vmem>>, vector<8x16xf32>
      tpu.vector_store %arg7[%c0_32, %c0_33], %62 {strides = array<i32>} : memref<8x16xf32, #tpu.memory_space<vmem>>, vector<8x16xf32>,
    } else {
    }
    %true = arith.constant true
    %43 = arith.xori %40, %true : i1
    %44 = arith.extui %43 : i1 to i32
    %c0_i32_25 = arith.constant 0 : i32
    %45 = arith.cmpi ne, %44, %c0_i32_25 : i32
    scf.if %45 {
      %c0_28 = arith.constant 0 : index
      %c0_29 = arith.constant 0 : index
      %49 = vector.load %arg7[%c0_28, %c0_29] : memref<8x16xf32, #tpu.memory_space<vmem>>, vector<8x16xf32>
      %50 = arith.addf %49, %6 : vector<8x16xf32>
      %c0_30 = arith.constant 0 : index
      %c0_31 = arith.constant 0 : index
      %51 = vector.load %arg7[%c0_30, %c0_31] : memref<8x16xf32, #tpu.memory_space<vmem>>, vector<8x16xf32>
      tpu.vector_store %arg7[%c0_30, %c0_31], %50 {strides = array<i32>} : memref<8x16xf32, #tpu.memory_space<vmem>>, vector<8x16xf32>,
    } else {
    }
    %c0_i32_26 = arith.constant 0 : i32
    %46 = arith.cmpi eq, %arg1, %c0_i32_26 : i32
    %47 = arith.extui %46 : i1 to i32
    %c0_i32_27 = arith.constant 0 : i32
    %48 = arith.cmpi ne, %47, %c0_i32_27 : i32
    scf.if %48 {
      %c0_28 = arith.constant 0 : index
      %c0_29 = arith.constant 0 : index
      %49 = vector.load %arg7[%c0_28, %c0_29] : memref<8x16xf32, #tpu.memory_space<vmem>>, vector<8x16xf32>
      %cst_30 = arith.constant dense<0.000000e+00> : vector<8xf32>
      %50 = vector.multi_reduction <add>, %49, %cst_30 [1] : vector<8x16xf32> to vector<8xf32>
      %51 = vector.shape_cast %50 : vector<8xf32> to vector<8x1xf32>
      %c0_31 = arith.constant 0 : index
      %c0_32 = arith.constant 0 : index
      %52 = vector.load %arg9[%c0_31, %c0_32] : memref<8x16xf32, #tpu.memory_space<vmem>>, vector<8x16xf32>
      %cst_33 = arith.constant dense<0.000000e+00> : vector<8xf32>
      %53 = vector.multi_reduction <add>, %52, %cst_33 [1] : vector<8x16xf32> to vector<8xf32>
      %54 = vector.shape_cast %53 : vector<8xf32> to vector<8x1xf32>
      %c0_34 = arith.constant 0 : index
      %c0_35 = arith.constant 0 : index
      %55 = vector.load %arg8[%c0_34, %c0_35] : memref<8x16xf32, #tpu.memory_space<vmem>>, vector<8x16xf32>
      %cst_36 = arith.constant dense<0.000000e+00> : vector<8xf32>
      %56 = vector.multi_reduction <add>, %55, %cst_36 [1] : vector<8x16xf32> to vector<8xf32>
      %57 = vector.shape_cast %56 : vector<8xf32> to vector<8x1xf32>
      %cst_37 = arith.constant 9.99999993E-9 : f32
      %58 = vector.broadcast %cst_37 : f32 to vector<8x1xf32>
      %59 = arith.addf %51, %58 : vector<8x1xf32>
      %60 = math.log %59 : vector<8x1xf32>
      %61 = arith.mulf %54, %60 : vector<8x1xf32>
      %62 = arith.subf %57, %61 : vector<8x1xf32>
      %cst_38 = arith.constant 9.99999993E-9 : f32
      %63 = vector.broadcast %cst_38 : f32 to vector<8x1xf32>
      %64 = arith.addf %54, %63 : vector<8x1xf32>
      %65 = arith.divf %62, %64 : vector<8x1xf32>
      %cst_39 = arith.constant 0.000000e+00 : f32
      %66 = vector.broadcast %cst_39 : f32 to vector<8x1xf32>
      %67 = arith.subf %66, %65 : vector<8x1xf32>
      %c0_40 = arith.constant 0 : index
      %c0_41 = arith.constant 0 : index
      %68 = vector.load %arg6[%c0_40, %c0_41] : memref<8x1xf32, #tpu.memory_space<vmem>>, vector<8x1xf32>
      tpu.vector_store %arg6[%c0_40, %c0_41], %67 {strides = array<i32>} : memref<8x1xf32, #tpu.memory_space<vmem>>, vector<8x1xf32>,
    } else {
    }
    return
  }
  func.func @transform_0(%arg0: i32, %arg1: i32) -> (i32, i32) {
    %c0_i32 = arith.constant 0 : i32
    %c0_i32_0 = arith.constant 0 : i32
    return %arg0, %c0_i32 : i32, i32
  }
  func.func @transform_1(%arg0: i32, %arg1: i32) -> (i32, i32) {
    %c0_i32 = arith.constant 0 : i32
    %c0_i32_0 = arith.constant 0 : i32
    return %c0_i32, %arg1 : i32, i32
  }
  func.func @transform_2(%arg0: i32, %arg1: i32) -> (i32, i32) {
    %c0_i32 = arith.constant 0 : i32
    %c0_i32_0 = arith.constant 0 : i32
    return %arg0, %c0_i32 : i32, i32
  }
  func.func @transform_3(%arg0: i32, %arg1: i32) -> (i32, i32) {
    %c0_i32 = arith.constant 0 : i32
    %c0_i32_0 = arith.constant 0 : i32
    return %c0_i32, %arg1 : i32, i32
  }
  func.func @transform_4(%arg0: i32, %arg1: i32) -> (i32, i32) {
    %c0_i32 = arith.constant 0 : i32
    %c0_i32_0 = arith.constant 0 : i32
    return %arg0, %c0_i32 : i32, i32
  }
}

</mosaic_0001>

<bundles_post_ra>
// kernel: tpu_custom_call.1
= control target key start
LH: loop header
LB: loop body
LE: loop exit
PB: predicated region body
PF: predicated region fallthrough
CT: control target
= control target key end

     0   :  { %s654_s15 = smov 0   ;;  %s656_s16 = smov 0   ;;  %s726_s0 = inlined_call_operand.vmem [shape: f32[16,32], index: 0, kind: input, shape index: {}]   ;;  %s727_s1 = inlined_call_operand.vmem [shape: f32[32,16], index: 1, kind: input, shape index: {}]   ;;  %s728_s2 = inlined_call_operand.vmem [shape: s32[16,1], index: 2, kind: input, shape index: {}]   ;;  %s729_s3 = inlined_call_operand.vmem [shape: s32[1,16], index: 3, kind: input, shape index: {}]   ;;  %s730_s4 = inlined_call_operand.vmem [shape: f32[16,1], index: 4, kind: output, shape index: {}]  }
   0x1   :  { %s658_s17 = smov 0  }
   0x2 LB: > { %s26_s18 = sadd.s32 1, %s620_s16  ;;  %p543_p0 = scmp.ge.s32.totalorder %s624_s17, 1  ;;  %s624_s17 = sphi %s658_s17, %s14_s17   ;;  %s620_s16 = sphi %s656_s16, %s734_s16   ;;  %s616_s15 = sphi %s654_s15, %s733_s15  }
   0x3   : > { %p28_p1 = scmp.ge.s32.totalorder %s26_s18, 2  ;;  %p199_p2 = scmp.lt.s32.totalorder %s624_s17, 3 }
   0x5   : > { %s736_s18 = smov (%p28_p1, %s26_s18), 0  ;;  %p200_p3 = pnand %p543_p0, %p199_p2 }
   0x6   : > { %p234_p4 = scmp.lt.s32.totalorder (!%p200_p3), %s616_s15, 1  ;;  %s548_s23 = sshll.u32 (!%p200_p3), %s616_s15, 3 }
   0x7   : > { %203 = sbr.rel (%p200_p3) target bundleno = 407 (0x197), region = 36 }
   0xc   : > { %v265_v0 = vld [vmem:[%s727_s1 + $0x18] sm:$0xff]  ;;  %v347_v1 = vlaneseq  ;;  %v626_v2 = vmov 0.0   ;;  %v264_v3 = vld [vmem:[%s727_s1 + $0x10] sm:$0xff]  ;;  %vm627_vm0 = vmmov 0   ;;  %s738_s15 = smov (!%p234_p4, %s616_s15), 1  ;;  %v628_v4 = vmov 0  }
   0xd   : > { %557 = vmatprep.subr.mxu0 %v626_v2  ;;  %565 = vmatprep.mubr.msk.f32.mxu0 %vm627_vm0, %v626_v2  ;;  %v391_v6 = vstv %s548_s23  ;;  %v263_v8 = vld [vmem:[%s727_s1 + $0x8] sm:$0xff]  ;;  %s681_s26 = sshll.u32 %s738_s15, 3  ;;  %vm257_vm2 = vcmask 130048   ;;  %v262_v10 = vld [vmem:[%s727_s1] sm:$0xff]  ;;  %vm266_vm3 = vcmask 261120   ;;  %vm434_vm13 = vcmask 7168  }
   0xe   : > { %558 = vmatpush3.msra.mxu0 %v265_v0  ;;  %595 = vset.pattern.permute.xlu0 %v628_v4  ;;  %v348_v5 = vshrl.u32 %v347_v1, 7  ;;  %v394_v7 = vand.u32 127, %v347_v1  ;;  %s237_s5 = scalar_lea.vmem %s726_s0, %s681_s26  ;;  %260 = vst.msk [vmem:[#allocation4] sm:$0xff] %vm257_vm2, %v626_v2  ;;  %258 = vst.msk [vmem:[#allocation2] sm:$0xff] %vm257_vm2, %v626_v2  ;;  %s245_s8 = scalar_lea.vmem %s728_s2, %s681_s26  ;;  %v343_v15 = vld [vmem:[%s729_s3] sm:$0x1] }
   0xf   : > { %559 = vmatprep.subr.mxu0 %v626_v2  ;;  %259 = vst.msk [vmem:[#allocation3] sm:$0xff] %vm257_vm2, %v626_v2  ;;  %v261_v11 = vld [vmem:[%s237_s5] sm:$0xff]  ;;  %vm359_vm7 = vcmp.ne.s32.totalorder %v343_v15, 4294967295  ;;  %s252_s13 = scalar_lea.vmem %s730_s4, %s681_s26 }
  0x10   : > { %560 = vmatpush3.msra.mxu0 %v264_v3  ;;  %v392_v9 = vadd.s32 %v391_v6, %v348_v5  ;;  %vm398_vm1 = vcmp.ge.s32.totalorder %v394_v7, 8  ;;  %v342_v12 = vld [vmem:[%s245_s8] sm:$0xff]  ;;  %v349_v16 = vsub.s32 0, %v348_v5  ;;  %v360_v17 = vsel %vm359_vm7, 1, %v628_v4 }
  0x11   : > { %561 = vmatprep.subr.mxu0 %v626_v2  ;;  %345 = vperm.xlu0 %595, %v342_v12   ;;  %vm352_vm6 = vcmp.ne.s32.totalorder %v342_v12, 4294967295 }
  0x12   : > { %562 = vmatpush3.msra.mxu0 %v263_v8  ;;  %vm397_vm4 = vcmp.eq.s32.totalorder %v392_v9, %v394_v7  ;;  %v353_v14 = vsel %vm352_vm6, 1, %v628_v4  ;;  %v350_v18 = vrot.slane %v343_v15, %v349_v16  ;;  %v364_v20 = vrot.slane %v360_v17, %v349_v16 }
  0x13   : > { %563 = vmatprep.subr.mxu0 %v626_v2  ;;  %vm698_vm5 = vmor %vm397_vm4, %vm398_vm1 }
  0x14   : > { %564 = vmatpush3.msra.mxu0 %v262_v10  ;;  %vm365_vm9 = vcmp.eq.s32.totalorder %v364_v20, 1 }
  0x15   : > { %566 = vmatmul.mubr.msk.f32.vlgmr.msra.gmra.mxu0 %vm266_vm3, %v261_v11  ;;  %355 = vperm.xlu0 %595, %v353_v14   ;;  %v372_v22 = vld [vmem:[#allocation4] sm:$0xff]  ;;  %v400_v33 = vld [vmem:[#allocation2] sm:$0xff] }
  0x16   : > { %v367_v25 = vld [vmem:[#allocation3] sm:$0xff] }
  0x8c   : > { %v346_v19 = vpop.permute.xlu0 %345 }
  0x8d   : > { %vm351_vm8 = vcmp.eq.s32.totalorder %v346_v19, %v350_v18 }
  0x90   : > { %v356_v21 = vpop.permute.xlu0 %355 }
  0x91   : > { %vm357_vm10 = vcmp.eq.s32.totalorder %v356_v21, 1 }
  0x92   : > { %vm358_vm11 = vmand %vm351_vm8, %vm357_vm10 }
  0x93   : > { %vm366_vm12 = vmand %vm358_vm11, %vm365_vm9 }
  0x94   : > { %v373_v23 = vsel %vm366_vm12, 1.0, %v626_v2 }
  0x95   : > { %v374_v24 = vadd.f32 %v373_v23, %v372_v22 }
  0x97   : > { %375 = vst.msk [vmem:[#allocation4] sm:$0xff] %vm257_vm2, %v374_v24 }
  0x9e   : > { %v417_v39 = vld [vmem:[#allocation4] sm:$0xff] }
  0x9f   : > { %v418_v40 = vsel %vm257_vm2, %v417_v39, 0.0 }
  0xd5   : > { %v336_v26 = vpop.f32.mrf.mxu0 }
  0xd6   : > { %v340_v27 = vmul.f32 1.442695, %v336_v26  ;;  %v368_v28 = vsel %vm366_vm12, %v336_v26, 0.0 }
  0xd7   : > { %v369_v29 = vadd.f32 %v368_v28, %v367_v25  ;;  %v567_v30 = vpop.f32.mrf.mxu0 }
  0xd8   : > { %596 = vpow2.f32 %v340_v27 }
  0xd9   : > { %371 = vst.msk [vmem:[#allocation3] sm:$0xff] %vm257_vm2, %v369_v29 }
  0xe0   : > { %v421_v31 = vld [vmem:[#allocation3] sm:$0xff] }
  0xe1   : > { %v422_v32 = vsel %vm257_vm2, %v421_v31, 0.0 }
  0xe2   : > { %423 = vadd.xlane.f32.xlu0 %v422_v32 }
  0xe5   : > { %v597_v34 = vpop.eup %596 }
  0xe6   : > { %v401_v35 = vsel %vm698_vm5, 0.0, %v597_v34 }
  0xe7   : > { %v402_v36 = vadd.f32 %v401_v35, %v400_v33 }
  0xe9   : > { %403 = vst.msk [vmem:[#allocation2] sm:$0xff] %vm257_vm2, %v402_v36 }
  0xf0   : > { %v413_v37 = vld [vmem:[#allocation2] sm:$0xff] }
  0xf1   : > { %v414_v38 = vsel %vm257_vm2, %v413_v37, 0.0 }
  0xf2   : > { %415 = vadd.xlane.f32.xlu1 %v414_v38 }
  0xf6   : > { %419 = vadd.xlane.f32.xlu1 %v418_v40 }
 0x16b   : > { %v424_v48 = vpop.xlane.xlu0 %423 }
 0x17b   : > { %v416_v41 = vpop.xlane.xlu1 %415 }
 0x17c   : > { %v425_v42 = vadd.f32 1e-08, %v416_v41 }
 0x17e   : > { %598 = vlog2.f32 %v425_v42 }
 0x17f   : > { %v420_v43 = vpop.xlane.xlu1 %419 }
 0x180   : > { %v430_v44 = vadd.f32 1e-08, %v420_v43 }
 0x182   : > { %600 = vrcp.f32 %v430_v44 }
 0x18b   : > { %v599_v45 = vpop.eup %598 }
 0x18c   : > { %v427_v46 = vmul.f32 0.6931472, %v599_v45 }
 0x18e   : > { %v428_v47 = vmul.f32 %v427_v46, %v420_v43 }
 0x18f   : > { %v601_v50 = vpop.eup %600 }
 0x190   : > { %v429_v49 = vsub.f32 %v424_v48, %v428_v47 }
 0x192   : > { %v432_v51 = vmul.f32 %v601_v50, %v429_v49 }
 0x194   : > { %v433_v52 = vsub.f32 0.0, %v432_v51 }
 0x196   : > { %435 = vst.msk [vmem:[%s252_s13] sm:$0xff] %vm434_vm13, %v433_v52 }
 0x197 PF: > { %s14_s17 = sadd.s32 1, %s624_s17   ;;  %s733_s15 = smov %s620_s16 }
 0x198   : > { %p11_p5 = scmp.ge.s32.totalorder %s14_s17, 4   ;;  %s734_s16 = smov %s736_s18 }
 0x19a   :  { %13 = sbr.rel (!%p11_p5) target bundleno = 2 (0x2), region = 91 }

</bundles_post_ra>
